<compile_context>
chip_gen: v7x
topology: tpu7x:2x2x1
jax: 0.10.0
libtpu: 0.0.40
codegen_flags: <defaults>
</compile_context>

<pallas_src>
import jax
import jax.numpy as jnp
from jax.experimental import pallas as pl
from jax.experimental.pallas import tpu as pltpu

IN_DIM = 512
HID_DIM = 100
HID_PAD = 128   # hidden dim padded to one full lane width
OUT_DIM = 1
MAX_TILE_B = 2048   # 2048 x 512 f32 = 4 MiB per buffer, 8 MiB double-buffered


def projection_head_kernel(x_ref, w1_ref, b1_ref, w2_ref, b2_ref, o_ref):
    # Linear 1 on the MXU: (tile_b, 512) @ (512, 128) -> f32 accumulation, + bias.
    h = jnp.dot(x_ref[...], w1_ref[...], preferred_element_type=jnp.float32)
    h = h + b1_ref[...]
    # Linear 2 (out_features = 1): VPU multiply + lane (XLU) reduction instead of
    # an N=1 MXU matmul. Padded columns [100:128] are exactly zero in both h and w2.
    scores = jnp.sum(h * w2_ref[...], axis=-1)                     # (tile_b,)
    # Lane-dense store: one (1, tile_b) row instead of a (tile_b, 1) column.
    o_ref[...] = (scores[None, :] + b2_ref[...]).astype(o_ref.dtype)


def projection_head(x, w1, b1, w2, b2, *, tile_b=None):
    """x: (B, 512); w1: (512, 100); b1: (1, 100); w2: (100, 1); b2: (1, 1)."""
    B, in_dim = x.shape
    assert in_dim == IN_DIM

    # Batch tile: big (roofline) but bounded by VMEM. For B <= MAX_TILE_B the
    # whole batch is one block (block == full dim, so no (8,128) divisibility
    # requirement and no padding). For larger B the 2048-row tile is a multiple
    # of (8, 128), the grid is >= 2 so the "parallel" axis can shard across
    # v7x's two TensorCores, and the x-stream DMA pipeline overlaps compute.
    if tile_b is None:
        tile_b = MAX_TILE_B if B > MAX_TILE_B else B
    else:
        tile_b = min(tile_b, B)
    if tile_b < B:
        # Lane-dense out block and (8,128) x block both need this alignment.
        assert tile_b % 128 == 0, "tile_b must be a multiple of 128 when tiling B"

    num_tiles = pl.cdiv(B, tile_b)

    # Zero-pad hidden dim 100 -> 128 (weights only: a few hundred KiB, one-off);
    # pass w2 transposed as a (1, 128) row.
    w1p = jnp.pad(w1.astype(x.dtype), ((0, 0), (0, HID_PAD - HID_DIM)))
    b1p = jnp.pad(b1.reshape(1, HID_DIM).astype(jnp.float32),
                  ((0, 0), (0, HID_PAD - HID_DIM)))
    w2row = jnp.pad(w2.reshape(1, HID_DIM).astype(jnp.float32),
                    ((0, 0), (0, HID_PAD - HID_DIM)))
    b2s = b2.reshape(1, 1).astype(jnp.float32)

    out_row = pl.pallas_call(
        projection_head_kernel,
        out_shape=jax.ShapeDtypeStruct((1, B), x.dtype),
        grid_spec=pltpu.PrefetchScalarGridSpec(
            num_scalar_prefetch=0,
            grid=(num_tiles,),
            in_specs=[
                # Streamed per grid step (the only per-step HBM traffic).
                # Ragged last block (B % tile_b != 0) is masked by Pallas.
                pl.BlockSpec((tile_b, IN_DIM), lambda i: (i, 0)),
                # Constant block index => fetched once, held resident in VMEM.
                pl.BlockSpec((IN_DIM, HID_PAD), lambda i: (0, 0)),  # W1 (padded)
                pl.BlockSpec((1, HID_PAD), lambda i: (0, 0)),       # b1 (padded)
                pl.BlockSpec((1, HID_PAD), lambda i: (0, 0)),       # w2 row (padded)
                pl.BlockSpec((1, 1), lambda i: (0, 0)),             # b2
            ],
            # Lane-dense output row: unmasked vst + contiguous writeback DMA.
            out_specs=pl.BlockSpec((1, tile_b), lambda i: (0, i)),
        ),
        compiler_params=pltpu.CompilerParams(
            dimension_semantics=("parallel",),
        ),
    )(x, w1p, b1p, w2row, b2s)

    # (1, B) row -> (B, 1) column, matching the PyTorch module's output shape.
    return out_row.reshape(B, OUT_DIM)


def init_params(key):
    """PyTorch nn.Linear default init: U[-1/sqrt(fan_in), 1/sqrt(fan_in)]."""
    k1, k2, k3, k4 = jax.random.split(key, 4)
    bound1 = 1.0 / (IN_DIM ** 0.5)
    bound2 = 1.0 / (HID_DIM ** 0.5)
    w1 = jax.random.uniform(k1, (IN_DIM, HID_DIM), jnp.float32, -bound1, bound1)
    b1 = jax.random.uniform(k2, (1, HID_DIM), jnp.float32, -bound1, bound1)
    w2 = jax.random.uniform(k3, (HID_DIM, OUT_DIM), jnp.float32, -bound2, bound2)
    b2 = jax.random.uniform(k4, (1, OUT_DIM), jnp.float32, -bound2, bound2)
    return w1, b1, w2, b2


if __name__ == "__main__":
    key = jax.random.PRNGKey(0)
    kx, kp = jax.random.split(key)

    # TODO(synk): at this tiny batch (B=8) the head should really be fused into
    # the upstream feature-extraction kernel (or left to XLA) — a standalone
    # pallas_call is launch/prologue dominated. Kept standalone per the spec.
    B = 8  # resnet18 avgpool output features = 512
    x = jax.random.normal(kx, (B, IN_DIM), dtype=jnp.float32)
    w1, b1, w2, b2 = init_params(kp)

    out = projection_head(x, w1, b1, w2, b2)
    out = jax.block_until_ready(out)

    # Pure-JAX reference check
    ref = (x @ w1 + b1) @ w2 + b2
    assert out.shape == (B, OUT_DIM), out.shape
    assert jnp.allclose(out, ref, atol=1e-5, rtol=1e-5), "mismatch vs reference"

    print("KERNEL_OK")
</pallas_src>

<mosaic_0001>
module attributes {stable_mosaic.version = 11 : i64} {
  func.func @projection_head_kernel(%arg0: i32, %arg1: memref<8x512xf32, #tpu.memory_space<vmem>>, %arg2: memref<512x128xf32, #tpu.memory_space<vmem>>, %arg3: memref<1x128xf32, #tpu.memory_space<vmem>>, %arg4: memref<1x128xf32, #tpu.memory_space<vmem>>, %arg5: memref<1x1xf32, #tpu.memory_space<vmem>>, %arg6: memref<1x8xf32, #tpu.memory_space<vmem>>) attributes {dimension_semantics = [#tpu.dimension_semantics<parallel>], iteration_bounds = array<i64: 1>, scalar_prefetch = 0 : i64, scratch_operands = 0 : i64, tpu.core_type = #tpu.core_type<tc>, window_params = [{transform_indices = @transform_0, window_bounds = array<i64: 8, 512>}, {pipeline_mode = #tpu.pipeline_mode<synchronous>, transform_indices = @transform_1, window_bounds = array<i64: 512, 128>}, {pipeline_mode = #tpu.pipeline_mode<synchronous>, transform_indices = @transform_2, window_bounds = array<i64: 1, 128>}, {pipeline_mode = #tpu.pipeline_mode<synchronous>, transform_indices = @transform_3, window_bounds = array<i64: 1, 128>}, {pipeline_mode = #tpu.pipeline_mode<synchronous>, transform_indices = @transform_4, window_bounds = array<i64: 1, 1>}, {transform_indices = @transform_5, window_bounds = array<i64: 1, 8>}]} {
    %c0 = arith.constant 0 : index
    %c0_0 = arith.constant 0 : index
    %0 = vector.load %arg1[%c0, %c0_0] : memref<8x512xf32, #tpu.memory_space<vmem>>, vector<8x512xf32>
    %c0_1 = arith.constant 0 : index
    %c0_2 = arith.constant 0 : index
    %1 = vector.load %arg2[%c0_1, %c0_2] : memref<512x128xf32, #tpu.memory_space<vmem>>, vector<512x128xf32>
    %cst = arith.constant dense<0.000000e+00> : vector<8x128xf32>
    %2 = tpu.matmul %0, %1, %cst {dimension_numbers = #tpu.dot_dimension_numbers<[1], [0], [0], [1], [0, 0, 1, 1], [], []>} : vector<8x512xf32>, vector<512x128xf32>, vector<8x128xf32> -> vector<8x128xf32>
    %c0_3 = arith.constant 0 : index
    %c0_4 = arith.constant 0 : index
    %3 = vector.load %arg3[%c0_3, %c0_4] : memref<1x128xf32, #tpu.memory_space<vmem>>, vector<1x128xf32>
    %4 = vector.broadcast %3 : vector<1x128xf32> to vector<8x128xf32>
    %5 = arith.addf %2, %4 : vector<8x128xf32>
    %c0_5 = arith.constant 0 : index
    %c0_6 = arith.constant 0 : index
    %6 = vector.load %arg4[%c0_5, %c0_6] : memref<1x128xf32, #tpu.memory_space<vmem>>, vector<1x128xf32>
    %7 = vector.broadcast %6 : vector<1x128xf32> to vector<8x128xf32>
    %8 = arith.mulf %5, %7 : vector<8x128xf32>
    %cst_7 = arith.constant dense<0.000000e+00> : vector<8xf32>
    %9 = vector.multi_reduction <add>, %8, %cst_7 [1] : vector<8x128xf32> to vector<8xf32>
    %10 = vector.shape_cast %9 : vector<8xf32> to vector<1x8xf32>
    %c0_8 = arith.constant 0 : index
    %c0_9 = arith.constant 0 : index
    %11 = vector.load %arg5[%c0_8, %c0_9] : memref<1x1xf32, #tpu.memory_space<vmem>>, vector<1x1xf32>
    %12 = vector.broadcast %11 : vector<1x1xf32> to vector<1x8xf32>
    %13 = arith.addf %10, %12 : vector<1x8xf32>
    %c0_10 = arith.constant 0 : index
    %c0_11 = arith.constant 0 : index
    %14 = vector.load %arg6[%c0_10, %c0_11] : memref<1x8xf32, #tpu.memory_space<vmem>>, vector<1x8xf32>
    tpu.vector_store %arg6[%c0_10, %c0_11], %13 {strides = array<i32>} : memref<1x8xf32, #tpu.memory_space<vmem>>, vector<1x8xf32>,
    return
  }
  func.func @transform_0(%arg0: i32) -> (i32, i32) {
    %c0_i32 = arith.constant 0 : i32
    %c0_i32_0 = arith.constant 0 : i32
    return %arg0, %c0_i32 : i32, i32
  }
  func.func @transform_1(%arg0: i32) -> (i32, i32) {
    %c0_i32 = arith.constant 0 : i32
    %c0_i32_0 = arith.constant 0 : i32
    %c0_i32_1 = arith.constant 0 : i32
    return %c0_i32, %c0_i32_0 : i32, i32
  }
  func.func @transform_2(%arg0: i32) -> (i32, i32) {
    %c0_i32 = arith.constant 0 : i32
    %c0_i32_0 = arith.constant 0 : i32
    %c0_i32_1 = arith.constant 0 : i32
    return %c0_i32, %c0_i32_0 : i32, i32
  }
  func.func @transform_3(%arg0: i32) -> (i32, i32) {
    %c0_i32 = arith.constant 0 : i32
    %c0_i32_0 = arith.constant 0 : i32
    %c0_i32_1 = arith.constant 0 : i32
    return %c0_i32, %c0_i32_0 : i32, i32
  }
  func.func @transform_4(%arg0: i32) -> (i32, i32) {
    %c0_i32 = arith.constant 0 : i32
    %c0_i32_0 = arith.constant 0 : i32
    %c0_i32_1 = arith.constant 0 : i32
    return %c0_i32, %c0_i32_0 : i32, i32
  }
  func.func @transform_5(%arg0: i32) -> (i32, i32) {
    %c0_i32 = arith.constant 0 : i32
    %c0_i32_0 = arith.constant 0 : i32
    return %c0_i32, %arg0 : i32, i32
  }
}

</mosaic_0001>

<bundles_post_ra>
// kernel: tpu_custom_call.1
= control target key start
LH: loop header
LB: loop body
LE: loop exit
PB: predicated region body
PF: predicated region fallthrough
CT: control target
= control target key end

     0   :  { %s614_s0 = inlined_call_operand.hbm [shape: f32[8,512], index: 0, kind: input, shape index: {}]   ;;  %s615_s1 = inlined_call_operand.hbm [shape: f32[512,128], index: 1, kind: input, shape index: {}]   ;;  %s616_s2 = inlined_call_operand.vmem [shape: f32[1,128], index: 2, kind: input, shape index: {}]   ;;  %s617_s3 = inlined_call_operand.vmem [shape: f32[1,128], index: 3, kind: input, shape index: {}]   ;;  %s618_s4 = inlined_call_operand.<no memory space> [shape: f32[1,1], index: 4, kind: input, shape index: {}]   ;;  %s619_s5 = inlined_call_operand.hbm [shape: f32[1,8], index: 5, kind: output, shape index: {}]  }
   0x1   :  { %v10_v0 = vstv %s618_s4 }
   0x2   :  { %11 = vst [vmem:[#allocation2] sm:$0x1] %v10_v0 }
   0x3   :  { %12 = vsyncpa [#allocation4], 0 }
   0x4   :  { %13 = vsyncpa [#allocation7], 0 }
   0x5   :  { %14 = vsyncpa [#allocation5], 0  ;;  %s526_s20 = smov [#allocation3]   ;;  %s527_s22 = smov [#allocation6]  }
   0x6   :  { %s21_s21 = sshll.u32 %s526_s20, 4  ;;  %s30_s23 = sshll.u32 %s527_s22, 4  ;;  %s22_s21 = int_to_ptr.vmem [resolvable:$true] %s21_s21  ;;  %s565_s23 = int_to_ptr.vmem [resolvable:$true] %s30_s23 }
   0x7   :  { %s454_s26 = scalar_lea.hbm %s614_s0, 512 }
   0x8   :  { %p455_p0 = scmp.ne.s32.totalorder %s614_s0, %s454_s26  ;;  %p458_p1 = scmp.lt.u32.totalorder %s454_s26, %s614_s0 }
   0xa   :  { %p460_p2 = pnand %p458_p1, %p455_p0 }
   0xc   :  { %463 = shalt.err (!%p460_p2)
}
   0xd   :  { %s464_s30 = scalar_lea.vmem %s22_s21, 512  ;;  %p469_p4 = scmp.lt.s32.totalorder %s22_s21, %s22_s21 }
   0xe   :  { %p465_p3 = scmp.ne.s32.totalorder %s22_s21, %s464_s30  ;;  %p470_p5 = scmp.lt.s32.totalorder %s464_s30, %s464_s30 }
  0x10   :  { %p471_p6 = por %p470_p5, %p469_p4 }
  0x12   :  { %p472_p7 = pnand %p471_p6, %p465_p3 }
  0x14   :  { %475 = shalt.err (!%p472_p7)
}
  0x15   :  { %24 = dma.hbm_to_vmem [thread:$0]  %s614_s0, 512, %s22_s21, [#allocation4]  }
  0x16   :  { %s476_s10 = scalar_lea.hbm %s615_s1, 8192 }
  0x17   :  { %p477_p8 = scmp.ne.s32.totalorder %s615_s1, %s476_s10  ;;  %p480_p9 = scmp.lt.u32.totalorder %s476_s10, %s615_s1 }
  0x19   :  { %p482_p10 = pnand %p480_p9, %p477_p8 }
  0x1b   :  { %485 = shalt.err (!%p482_p10)
}
  0x1c   :  { %s486_s15 = scalar_lea.vmem %s565_s23, 8192  ;;  %p491_p12 = scmp.lt.s32.totalorder %s565_s23, %s565_s23 }
  0x1d   :  { %p487_p11 = scmp.ne.s32.totalorder %s565_s23, %s486_s15  ;;  %p492_p13 = scmp.lt.s32.totalorder %s486_s15, %s486_s15 }
  0x1f   :  { %p493_p0 = por %p492_p13, %p491_p12 }
  0x21   :  { %p494_p1 = pnand %p493_p0, %p487_p11 }
  0x23   :  { %497 = shalt.err (!%p494_p1)
}
  0x24   :  { %s528_s0 = smov 128   ;;  %s529_s16 = smov 8  }
  0x25   :  { %36 = dma.hbm_to_vmem [thread:$0]  %s615_s1, 8192, %s565_s23, [#allocation7], %s528_s0, %s528_s0, %s529_s16  }
  0x26   :  { %520 = dma.done.wait [#allocation4], 512  }
  0x27   :  { %521 = vsyncadd [#allocation4], 4294966784 }
  0x28   :  { %522 = dma.done.wait [#allocation7], 8192  }
  0x29   :  { %523 = vsyncadd [#allocation7], 4294959104  ;;  %v69_v1 = vld [vmem:[#allocation6 + $0x80] sm:$0xff]  ;;  %v70_v2 = vld [vmem:[#allocation6 + $0x88] sm:$0xff]  ;;  %vm293_vm0 = vcmask 57344  }
  0x2a   :  { %v53_v3 = vld [vmem:[#allocation6] sm:$0xff]  ;;  %v383_v4 = vpack.c.bf16 %v70_v2, %v69_v1  ;;  %v54_v5 = vld [vmem:[#allocation6 + $0x8] sm:$0xff]  ;;  %v71_v12 = vld [vmem:[#allocation6 + $0x90] sm:$0xff] }
  0x2b   :  { %v101_v6 = vld [vmem:[#allocation6 + $0x180] sm:$0xff]  ;;  %v102_v7 = vld [vmem:[#allocation6 + $0x188] sm:$0xff]  ;;  %v385_v8 = vpack.c.bf16 %v54_v5, %v53_v3  ;;  %v72_v14 = vld [vmem:[#allocation6 + $0x98] sm:$0xff] }
  0x2c   :  { %v415_v9 = vpack.c.bf16 %v102_v7, %v101_v6  ;;  %v85_v10 = vld [vmem:[#allocation6 + $0x100] sm:$0xff]  ;;  %v86_v11 = vld [vmem:[#allocation6 + $0x108] sm:$0xff]  ;;  %384 = vmatprep.subr.bf16.mxu0 %v383_v4  ;;  %v55_v15 = vld [vmem:[#allocation6 + $0x10] sm:$0xff]  ;;  %v387_v17 = vpack.c.bf16 %v72_v14, %v71_v12 }
  0x2d   :  { %v417_v13 = vpack.c.bf16 %v86_v11, %v85_v10  ;;  %v56_v16 = vld [vmem:[#allocation6 + $0x18] sm:$0xff]  ;;  %386 = vmatpush3.bf16.msra.mxu0 %v385_v8  ;;  %v103_v19 = vld [vmem:[#allocation6 + $0x190] sm:$0xff]  ;;  %v73_v24 = vld [vmem:[#allocation6 + $0xa0] sm:$0xff] }
  0x2e   :  { %416 = vmatprep.subr.bf16.mxu1 %v415_v9  ;;  %v389_v18 = vpack.c.bf16 %v56_v16, %v55_v15  ;;  %v104_v20 = vld [vmem:[#allocation6 + $0x198] sm:$0xff]  ;;  %v87_v21 = vld [vmem:[#allocation6 + $0x110] sm:$0xff]  ;;  %v74_v25 = vld [vmem:[#allocation6 + $0xa8] sm:$0xff]  ;;  %388 = vmatprep.subr.bf16.mxu0 %v387_v17 }
  0x2f   :  { %418 = vmatpush3.bf16.msra.mxu1 %v417_v13  ;;  %v419_v22 = vpack.c.bf16 %v104_v20, %v103_v19  ;;  %v88_v23 = vld [vmem:[#allocation6 + $0x118] sm:$0xff]  ;;  %v391_v27 = vpack.c.bf16 %v74_v25, %v73_v24  ;;  %v57_v28 = vld [vmem:[#allocation6 + $0x20] sm:$0xff]  ;;  %v58_v29 = vld [vmem:[#allocation6 + $0x28] sm:$0xff] }
  0x30   :  { %v421_v26 = vpack.c.bf16 %v88_v23, %v87_v21  ;;  %v105_v30 = vld [vmem:[#allocation6 + $0x1a0] sm:$0xff]  ;;  %v106_v31 = vld [vmem:[#allocation6 + $0x1a8] sm:$0xff]  ;;  %v393_v34 = vpack.c.bf16 %v58_v29, %v57_v28  ;;  %v75_v36 = vld [vmem:[#allocation6 + $0xb0] sm:$0xff] }
  0x31   :  { %420 = vmatprep.subr.bf16.mxu1 %v419_v22  ;;  %v89_v32 = vld [vmem:[#allocation6 + $0x120] sm:$0xff]  ;;  %v90_v33 = vld [vmem:[#allocation6 + $0x128] sm:$0xff]  ;;  %390 = vmatpush3.bf16.msra.mxu0 %v389_v18  ;;  %v423_v35 = vpack.c.bf16 %v106_v31, %v105_v30  ;;  %v76_v37 = vld [vmem:[#allocation6 + $0xb8] sm:$0xff] }
  0x32   :  { %v59_v38 = vld [vmem:[#allocation6 + $0x30] sm:$0xff]  ;;  %392 = vmatprep.subr.bf16.mxu0 %v391_v27  ;;  %v425_v39 = vpack.c.bf16 %v90_v33, %v89_v32  ;;  %v395_v40 = vpack.c.bf16 %v76_v37, %v75_v36  ;;  %v60_v41 = vld [vmem:[#allocation6 + $0x38] sm:$0xff]  ;;  %v77_v47 = vld [vmem:[#allocation6 + $0xc0] sm:$0xff]  ;;  %v530_v37 = vmov 0  }
  0x33   :  { %422 = vmatpush3.bf16.msra.mxu1 %v421_v26  ;;  %v107_v42 = vld [vmem:[#allocation6 + $0x1b0] sm:$0xff]  ;;  %v108_v43 = vld [vmem:[#allocation6 + $0x1b8] sm:$0xff]  ;;  %v78_v48 = vld [vmem:[#allocation6 + $0xc8] sm:$0xff]  ;;  %v397_v49 = vpack.c.bf16 %v60_v41, %v59_v38  ;;  %453 = vset.pattern.permute.xlu0 %v530_v37 }
  0x34   :  { %424 = vmatprep.subr.bf16.mxu1 %v423_v35  ;;  %v427_v44 = vpack.c.bf16 %v108_v43, %v107_v42  ;;  %v91_v45 = vld [vmem:[#allocation6 + $0x130] sm:$0xff]  ;;  %v92_v46 = vld [vmem:[#allocation6 + $0x138] sm:$0xff]  ;;  %v109_v50 = vld [vmem:[#allocation6 + $0x1c0] sm:$0xff]  ;;  %v399_v53 = vpack.c.bf16 %v78_v48, %v77_v47 }
  0x35   :  { %394 = vmatpush3.bf16.msra.mxu0 %v393_v34  ;;  %v110_v51 = vld [vmem:[#allocation6 + $0x1c8] sm:$0xff]  ;;  %v429_v52 = vpack.c.bf16 %v92_v46, %v91_v45  ;;  %v61_v54 = vld [vmem:[#allocation6 + $0x40] sm:$0xff]  ;;  %v79_v59 = vld [vmem:[#allocation6 + $0xd0] sm:$0xff] }
  0x36   :  { %396 = vmatprep.subr.bf16.mxu0 %v395_v40  ;;  %v62_v55 = vld [vmem:[#allocation6 + $0x48] sm:$0xff]  ;;  %v93_v56 = vld [vmem:[#allocation6 + $0x140] sm:$0xff]  ;;  %v431_v57 = vpack.c.bf16 %v110_v51, %v109_v50  ;;  %v80_v60 = vld [vmem:[#allocation6 + $0xd8] sm:$0xff]  ;;  %v280_v50 = vlaneseq }
  0x37   :  { %426 = vmatpush3.bf16.msra.mxu1 %v425_v39  ;;  %v94_v58 = vld [vmem:[#allocation6 + $0x148] sm:$0xff]  ;;  %v111_v61 = vld [vmem:[#allocation6 + $0x1d0] sm:$0xff]  ;;  %v112_v62 = vld [vmem:[#allocation6 + $0x1d8] sm:$0xff]  ;;  %v401_v63 = vpack.c.bf16 %v62_v55, %v61_v54  ;;  %v403_v1 = vpack.c.bf16 %v80_v60, %v79_v59 }
  0x38   :  { %428 = vmatprep.subr.bf16.mxu1 %v427_v44  ;;  %v433_v0 = vpack.c.bf16 %v94_v58, %v93_v56  ;;  %v63_v2 = vld [vmem:[#allocation6 + $0x50] sm:$0xff]  ;;  %v64_v3 = vld [vmem:[#allocation6 + $0x58] sm:$0xff]  ;;  %v435_v5 = vpack.c.bf16 %v112_v62, %v111_v61  ;;  %v81_v7 = vld [vmem:[#allocation6 + $0xe0] sm:$0xff]  ;;  %v281_v51 = vshrl.u32 %v280_v50, 7  ;;  %v287_v54 = vand.u32 127, %v280_v50 }
  0x39   :  { %398 = vmatpush3.bf16.msra.mxu0 %v397_v49  ;;  %v95_v4 = vld [vmem:[#allocation6 + $0x150] sm:$0xff]  ;;  %v96_v6 = vld [vmem:[#allocation6 + $0x158] sm:$0xff]  ;;  %v82_v8 = vld [vmem:[#allocation6 + $0xe8] sm:$0xff]  ;;  %v405_v11 = vpack.c.bf16 %v64_v3, %v63_v2 }
  0x3a   :  { %400 = vmatprep.subr.bf16.mxu0 %v399_v53  ;;  %v113_v9 = vld [vmem:[#allocation6 + $0x1e0] sm:$0xff]  ;;  %v114_v10 = vld [vmem:[#allocation6 + $0x1e8] sm:$0xff]  ;;  %v437_v14 = vpack.c.bf16 %v96_v6, %v95_v4  ;;  %v407_v15 = vpack.c.bf16 %v82_v8, %v81_v7  ;;  %v83_v20 = vld [vmem:[#allocation6 + $0xf0] sm:$0xff]  ;;  %v282_v53 = vsub.s32 0, %v281_v51  ;;  %v290_v56 = vsub.s32 %v287_v54, %v281_v51 }
  0x3b   :  { %430 = vmatpush3.bf16.msra.mxu1 %v429_v52  ;;  %v65_v12 = vld [vmem:[#allocation6 + $0x60] sm:$0xff]  ;;  %v66_v13 = vld [vmem:[#allocation6 + $0x68] sm:$0xff]  ;;  %v439_v19 = vpack.c.bf16 %v114_v10, %v113_v9  ;;  %v84_v21 = vld [vmem:[#allocation6 + $0xf8] sm:$0xff] }
  0x3c   :  { %432 = vmatprep.subr.bf16.mxu1 %v431_v57  ;;  %v97_v16 = vld [vmem:[#allocation6 + $0x160] sm:$0xff]  ;;  %v98_v17 = vld [vmem:[#allocation6 + $0x168] sm:$0xff]  ;;  %v52_v22 = vld [vmem:[#allocation3 + $0x18] sm:$0xff]  ;;  %v409_v25 = vpack.c.bf16 %v66_v13, %v65_v12  ;;  %v411_v27 = vpack.c.bf16 %v84_v21, %v83_v20 }
  0x3d   :  { %402 = vmatpush3.bf16.msra.mxu0 %v401_v63  ;;  %v50_v18 = vld [vmem:[#allocation3 + $0x8] sm:$0xff]  ;;  %v115_v23 = vld [vmem:[#allocation6 + $0x1f0] sm:$0xff]  ;;  %v116_v24 = vld [vmem:[#allocation6 + $0x1f8] sm:$0xff]  ;;  %258 = vmatprep.mubr.f32.mxu1 %v52_v22  ;;  %v441_v26 = vpack.c.bf16 %v98_v17, %v97_v16 }
  0x3e   :  { %404 = vmatprep.subr.bf16.mxu0 %v403_v1  ;;  %188 = vmatprep.mubr.f32.mxu0 %v50_v18  ;;  %v67_v28 = vld [vmem:[#allocation6 + $0x70] sm:$0xff]  ;;  %v68_v29 = vld [vmem:[#allocation6 + $0x78] sm:$0xff]  ;;  %v443_v30 = vpack.c.bf16 %v116_v24, %v115_v23  ;;  %v49_v35 = vld [vmem:[#allocation3] sm:$0xff] }
  0x3f   :  { %434 = vmatpush3.bf16.msra.mxu1 %v433_v0  ;;  %v99_v31 = vld [vmem:[#allocation6 + $0x170] sm:$0xff]  ;;  %v100_v32 = vld [vmem:[#allocation6 + $0x178] sm:$0xff]  ;;  %v413_v33 = vpack.c.bf16 %v68_v29, %v67_v28 }
  0x40   :  { %436 = vmatprep.subr.bf16.mxu1 %v435_v5  ;;  %v445_v34 = vpack.c.bf16 %v100_v32, %v99_v31  ;;  %v51_v36 = vld [vmem:[#allocation3 + $0x10] sm:$0xff]  ;;  %v311_v39 = vld [vmem:[%s616_s2] ss:$0 sm:$0xff]  ;;  %s531_s2 = smov [#allocation8]  }
  0x41   :  { %406 = vmatpush3.bf16.msra.mxu0 %v405_v11  ;;  %v312_v46 = vld [vmem:[%s617_s3] ss:$0 sm:$0xff]  ;;  %s301_s22 = sshll.u32 %s531_s2, 4  ;;  %s302_s22 = int_to_ptr.vmem [resolvable:$true] %s301_s22 }
  0x42   :  { %408 = vmatprep.subr.bf16.mxu0 %v407_v15  ;;  %v274_v49 = vld [vmem:[#allocation2] sm:$0x1]  ;;  %s498_s3 = scalar_lea.vmem %s302_s22, 16  ;;  %s502_s23 = scalar_lea.vmem %s302_s22, 32 }
  0x43   :  { %438 = vmatpush3.bf16.msra.mxu1 %v437_v14  ;;  %p499_p2 = scmp.ne.s32.totalorder %s302_s22, %s498_s3  ;;  %p503_p3 = scmp.lt.s32.totalorder %s302_s22, %s302_s22 }
  0x44   :  { %440 = vmatprep.subr.bf16.mxu1 %v439_v19  ;;  %p504_p4 = scmp.lt.s32.totalorder %s502_s23, %s498_s3 }
  0x45   :  { %410 = vmatpush3.bf16.msra.mxu0 %v409_v25 }
  0x46   :  { %412 = vmatprep.subr.bf16.mxu0 %v411_v27  ;;  %p505_p5 = por %p504_p4, %p503_p3 }
  0x47   :  { %442 = vmatpush3.bf16.msra.mxu1 %v441_v26 }
  0x48   :  { %444 = vmatprep.subr.bf16.mxu1 %v443_v30  ;;  %p506_p6 = pnand %p505_p5, %p499_p2 }
  0x49   :  { %414 = vmatpush3.bf16.msra.mxu0 %v413_v33 }
  0x4b   :  { %446 = vmatpush3.bf16.msra.mxu1 %v445_v34 }
  0x4c   :  { %189 = vmatmul.mubr.f32.vlgmr.msra.gmra.mrb[0].mxu0 %v49_v35 }
  0x4e   :  { %259 = vmatmul.mubr.f32.vlgmr.msra.gmra.mrb[0].mxu1 %v51_v36 }
 0x11f   :  { %v345_v38 = vpop.f32.mrb[0].mxu0 }
 0x120   :  { %v346_v40 = vpop.f32.mrb[1].mxu0 }
 0x121   :  { %v380_v41 = vpop.f32.mrb[0].mxu1  ;;  %v347_v42 = vadd.f32 %v346_v40, %v345_v38 }
 0x122   :  { %v381_v43 = vpop.f32.mrb[1].mxu1 }
 0x123   :  { %v382_v44 = vadd.f32 %v381_v43, %v380_v41  ;;  %v191_v45 = vadd.f32 %v347_v42, %v311_v39 }
 0x125   :  { %v261_v47 = vadd.f32 %v382_v44, %v191_v45 }
 0x127   :  { %v271_v48 = vmul.f32 %v312_v46, %v261_v47 }
 0x129   :  { %272 = vadd.xlane.f32.xlu0 %v271_v48 }
 0x13f   :  { %277 = vperm.xlu0 %453, %v274_v49  }
 0x1b6   :  { %v273_v52 = vpop.xlane.xlu0 %272 }
 0x1be   :  { %v278_v55 = vpop.permute.xlu0 %277 }
 0x1bf   :  { %v283_v57 = vrot.slane %v278_v55, %v282_v53 }
 0x1c1   :  { %v284_v58 = vadd.f32 %v283_v57, %v273_v52 }
 0x1c3   :  { %v291_v59 = vrot.slane %v284_v58, %v290_v56 }
 0x1c5   :  { %294 = vst.msk [vmem:[#allocation8] sm:$0x1] %vm293_vm0, %v291_v59 }
 0x1c6   :  { %509 = shalt.err (!%p506_p6)
}
 0x1c7   :  { %s510_s26 = scalar_lea.hbm %s619_s5, 16 }
 0x1c8   :  { %p511_p7 = scmp.ne.s32.totalorder %s619_s5, %s510_s26  ;;  %p514_p8 = scmp.lt.u32.totalorder %s510_s26, %s619_s5 }
 0x1ca   :  { %p516_p9 = pnand %p514_p8, %p511_p7 }
 0x1cc   :  { %519 = shalt.err (!%p516_p9)
}
 0x1cd   :  { %304 = dma.vmem_to_hbm [thread:$0]  %s302_s22, 16, %s619_s5, [#allocation5]  }
 0x1ce   :  { %524 = dma.done.wait [#allocation5], 16  }
 0x1cf   :  { %525 = vsyncadd [#allocation5], 4294967280 }
 0x1d0   :  { %308 = vsyncpa [#allocation4], 1 }
 0x1d1   :  { %309 = vsyncpa [#allocation7], 1 }
 0x1d2   :  { %310 = vsyncpa [#allocation5], 1 }

</bundles_post_ra>
